<compile_context>
chip_gen: v6e
topology: v6e:2x2x1
jax: 0.10.0
libtpu: 0.0.40
codegen_flags: <defaults>
</compile_context>

<pallas_src>
import functools

import jax
import jax.numpy as jnp
from jax.experimental import pallas as pl
from jax.experimental.pallas import tpu as pltpu


def _round_up(x: int, m: int) -> int:
    return (x + m - 1) // m * m


def _make_mlp_kernel(n_layers: int, has_cond: bool, out_sizes, b_offs):
    """Kernel for the Discriminator MLP (tanh after every layer but the last).

    Ref order: (x, [c], w_0x, [w_0c], w_1, ..., w_{L-2}, w_last_pad, b_packed, out).
    Weights are in PyTorch [out, in] layout (bf16); the last-layer weight is
    zero-padded to [8, H_last].  b_packed is a single [sum_8aligned(H_l), 1]
    f32 column; segment `l` starts at static offset b_offs[l].
    All intermediates are lane-dense [H_l, TB].
    """
    n_w = n_layers + (1 if has_cond else 0)

    def kernel(*refs):
        idx = 0
        x_ref = refs[idx]; idx += 1
        c_ref = None
        if has_cond:
            c_ref = refs[idx]; idx += 1
        w_refs = refs[idx:idx + n_w]; idx += n_w
        b_ref = refs[idx]; idx += 1
        out_ref = refs[idx]

        def bias(li):                                   # [H_l, 1] f32 column
            return b_ref[b_offs[li]:b_offs[li] + out_sizes[li], :]

        # Layer 0: Linear(n_inputs, hidden[0]) with the concat(X, C) fused as
        # two split-K matmuls.  Contract the feature axis of the [TB, feat]
        # tile directly (trans_b form) so the result is lane-dense [H0, TB].
        x = x_ref[...].astype(jnp.bfloat16)             # no-op if already bf16
        wi = 0
        h = jax.lax.dot_general(
            w_refs[wi][...], x, (((1,), (1,)), ((), ())),
            preferred_element_type=jnp.float32)         # [H0, TB]
        wi += 1
        if has_cond:
            c = c_ref[...].astype(jnp.bfloat16)
            h = h + jax.lax.dot_general(
                w_refs[wi][...], c, (((1,), (1,)), ((), ())),
                preferred_element_type=jnp.float32)
            wi += 1
        h = jnp.tanh(h + bias(0))                       # f32 bias-add + tanh (EUP)

        # Hidden layers 1 .. n_layers-2: h_out = W_l @ h_in  -> [H_out, TB].
        for li in range(1, n_layers - 1):
            h = jnp.dot(w_refs[wi][...], h.astype(jnp.bfloat16),
                        preferred_element_type=jnp.float32)
            wi += 1
            h = jnp.tanh(h + bias(li))

        # Final layer: Linear(hidden[-1], 1); weight padded to [8, H_last] so
        # the matmul has a full sublane tile; keep row 0 -> lane-dense [1, TB].
        y = jnp.dot(w_refs[wi][...], h.astype(jnp.bfloat16),
                    preferred_element_type=jnp.float32)          # [8, TB]
        out_ref[...] = (y[0:1, :] + bias(n_layers - 1)).astype(out_ref.dtype)

    return kernel


def init_discriminator_params(key, n_inputs, hidden=(10,)):
    """nn.Linear-style init; weights stored in PyTorch [out, in] layout."""
    sizes = [n_inputs] + list(hidden) + [1]
    ws, bs = [], []
    for i in range(len(sizes) - 1):
        fan_in, fan_out = sizes[i], sizes[i + 1]
        key, kw, kb = jax.random.split(key, 3)
        bound = 1.0 / jnp.sqrt(jnp.float32(fan_in))
        ws.append(jax.random.uniform(kw, (fan_out, fan_in), jnp.float32, -bound, bound))
        bs.append(jax.random.uniform(kb, (fan_out,), jnp.float32, -bound, bound))
    return ws, bs


@functools.partial(jax.jit, static_argnames=("tile_batch",))
def _forward_impl(X, C, ws, bs, tile_batch):
    B, feat = X.shape
    n_layers = len(ws)
    has_cond = C is not None
    # Upstream module always has >= 1 hidden layer (hidden[-1] is indexed).
    assert n_layers >= 2, "Discriminator always has >= 1 hidden layer + head"

    # --- batch tiling ---------------------------------------------------
    # Multi-tile path: tb is a multiple of 128 (output lane constraint) and is
    # capped so the parallel grid has >= 2 tiles (v7x megacore).  Single-tile
    # path: block shapes equal the full arrays, so no padding at all.
    tb = min(_round_up(tile_batch, 128), _round_up(pl.cdiv(B, 2), 128))
    if tb >= B:
        tb, n_tiles = B, 1
    else:
        n_tiles = pl.cdiv(B, tb)
    b_out = n_tiles * tb          # output allocated padded -> no ragged stores

    # --- kernel-layout params --------------------------------------------
    out_sizes = tuple(int(w.shape[0]) for w in ws)       # H_0 .. H_{L-2}, 1
    kws = []
    w0 = ws[0].astype(jnp.bfloat16)                      # [H0, feat(+cond)]
    if has_cond:
        kws += [w0[:, :feat], w0[:, feat:]]              # fused-concat split
    else:
        kws.append(w0)
    kws += [w.astype(jnp.bfloat16) for w in ws[1:-1]]
    kws.append(jnp.pad(ws[-1], ((0, 7), (0, 0))).astype(jnp.bfloat16))  # [8, H_last]

    # Pack all biases into ONE column operand (8-row-aligned static segments).
    b_offs, seg = [], 0
    b_parts = []
    for hsz, b in zip(out_sizes, bs):
        b_offs.append(seg)
        pad = _round_up(hsz, 8)
        seg += pad
        b_parts.append(jnp.pad(b.astype(jnp.float32), (0, pad - hsz)))
    b_packed = jnp.concatenate(b_parts).reshape(seg, 1)

    resident = lambda i: (0, 0)   # weights/bias: DMA'd once, stay in VMEM
    inputs = [X]
    in_specs = [pl.BlockSpec((tb, feat), lambda i: (i, 0))]
    if has_cond:
        inputs.append(C)
        in_specs.append(pl.BlockSpec((tb, C.shape[1]), lambda i: (i, 0)))
    inputs += kws
    in_specs += [pl.BlockSpec(w.shape, resident) for w in kws]
    inputs.append(b_packed)
    in_specs.append(pl.BlockSpec(b_packed.shape, resident))

    out = pl.pallas_call(
        _make_mlp_kernel(n_layers, has_cond, out_sizes, tuple(b_offs)),
        grid=(n_tiles,),
        in_specs=in_specs,
        out_specs=pl.BlockSpec((1, tb), lambda i: (0, i)),   # lane-dense output
        out_shape=jax.ShapeDtypeStruct((1, b_out), jnp.float32),
        compiler_params=pltpu.CompilerParams(
            dimension_semantics=("parallel",),               # megacore split (v7x)
            vmem_limit_bytes=32 * 1024 * 1024),               # ample on v5e/v6e/v7x
    )(*inputs)
    return out.reshape(b_out, 1)[:B]


def discriminator_forward(params, X, C=None, tile_batch=1024):
    """pred = MLP(concat(X, C)) -> shape [batch, 1]."""
    ws, bs = params
    return _forward_impl(X, C, tuple(ws), tuple(bs), tile_batch)


def _reference(params, X, C=None):
    """Plain-JAX reference mirroring the kernel numerics (bf16 matmul inputs,
    f32 accumulation / bias / tanh). Weights are PyTorch [out, in] layout."""
    ws, bs = params
    h = X if C is None else jnp.concatenate([X, C], axis=1)
    for i, (w, b) in enumerate(zip(ws, bs)):
        h = jnp.dot(h.astype(jnp.bfloat16), w.T.astype(jnp.bfloat16),
                    preferred_element_type=jnp.float32) + b
        if i < len(ws) - 1:
            h = jnp.tanh(h)
    return h


if __name__ == "__main__":
    key = jax.random.PRNGKey(0)
    kx, kc, kp, kp2, kx2 = jax.random.split(key, 5)

    # Case 1: conditional discriminator; B=300 with tb=256 -> 2-tile "parallel"
    # grid plus a ragged last input tile (no wrapper pad), 2 hidden layers.
    batch, feat, cond = 300, 4, 4
    hidden = (32, 16)
    X = jax.random.normal(kx, (batch, feat), jnp.float32)
    C = jax.random.normal(kc, (batch, cond), jnp.float32)
    params = init_discriminator_params(kp, n_inputs=feat + cond, hidden=hidden)

    pred = discriminator_forward(params, X, C)
    jax.block_until_ready(pred)
    assert pred.shape == (batch, 1), pred.shape
    ref = _reference(params, X, C)
    assert jnp.allclose(pred, ref, atol=1e-2, rtol=1e-2), \
        float(jnp.max(jnp.abs(pred - ref)))

    # Case 2: unconditional path (C is None), module defaults, single-tile grid
    # with blocks equal to the full (unpadded) arrays.
    X2 = jax.random.normal(kx2, (8, 8), jnp.float32)
    params2 = init_discriminator_params(kp2, n_inputs=8, hidden=(10,))
    pred2 = discriminator_forward(params2, X2, None)
    jax.block_until_ready(pred2)
    assert pred2.shape == (8, 1), pred2.shape
    ref2 = _reference(params2, X2, None)
    assert jnp.allclose(pred2, ref2, atol=1e-2, rtol=1e-2)

    print("KERNEL_OK")
</pallas_src>

<mosaic_0001>
module attributes {stable_mosaic.version = 11 : i64} {
  func.func @kernel(%arg0: i32, %arg1: memref<256x4xf32, #tpu.memory_space<vmem>>, %arg2: memref<256x4xf32, #tpu.memory_space<vmem>>, %arg3: memref<32x4xbf16, #tpu.memory_space<vmem>>, %arg4: memref<32x4xbf16, #tpu.memory_space<vmem>>, %arg5: memref<16x32xbf16, #tpu.memory_space<vmem>>, %arg6: memref<8x16xbf16, #tpu.memory_space<vmem>>, %arg7: memref<56x1xf32, #tpu.memory_space<vmem>>, %arg8: memref<1x256xf32, #tpu.memory_space<vmem>>) attributes {dimension_semantics = [#tpu.dimension_semantics<parallel>], iteration_bounds = array<i64: 2>, scalar_prefetch = 0 : i64, scratch_operands = 0 : i64, tpu.core_type = #tpu.core_type<tc>, window_params = [{transform_indices = @transform_0, window_bounds = array<i64: 256, 4>}, {transform_indices = @transform_1, window_bounds = array<i64: 256, 4>}, {pipeline_mode = #tpu.pipeline_mode<synchronous>, transform_indices = @transform_2, window_bounds = array<i64: 32, 4>}, {pipeline_mode = #tpu.pipeline_mode<synchronous>, transform_indices = @transform_3, window_bounds = array<i64: 32, 4>}, {pipeline_mode = #tpu.pipeline_mode<synchronous>, transform_indices = @transform_4, window_bounds = array<i64: 16, 32>}, {pipeline_mode = #tpu.pipeline_mode<synchronous>, transform_indices = @transform_5, window_bounds = array<i64: 8, 16>}, {pipeline_mode = #tpu.pipeline_mode<synchronous>, transform_indices = @transform_6, window_bounds = array<i64: 56, 1>}, {transform_indices = @transform_7, window_bounds = array<i64: 1, 256>}]} {
    %c0 = arith.constant 0 : index
    %c0_0 = arith.constant 0 : index
    %0 = vector.load %arg1[%c0, %c0_0] : memref<256x4xf32, #tpu.memory_space<vmem>>, vector<256x4xf32>
    %1 = arith.truncf %0 : vector<256x4xf32> to vector<256x4xbf16>
    %c0_1 = arith.constant 0 : index
    %c0_2 = arith.constant 0 : index
    %2 = vector.load %arg3[%c0_1, %c0_2] : memref<32x4xbf16, #tpu.memory_space<vmem>>, vector<32x4xbf16>
    %cst = arith.constant dense<0.000000e+00> : vector<32x256xf32>
    %3 = tpu.matmul %2, %1, %cst {dimension_numbers = #tpu.dot_dimension_numbers<[1], [1], [0], [0], [0, 0, 1, 0], [], []>} : vector<32x4xbf16>, vector<256x4xbf16>, vector<32x256xf32> -> vector<32x256xf32>
    %c0_3 = arith.constant 0 : index
    %c0_4 = arith.constant 0 : index
    %4 = vector.load %arg2[%c0_3, %c0_4] : memref<256x4xf32, #tpu.memory_space<vmem>>, vector<256x4xf32>
    %5 = arith.truncf %4 : vector<256x4xf32> to vector<256x4xbf16>
    %c0_5 = arith.constant 0 : index
    %c0_6 = arith.constant 0 : index
    %6 = vector.load %arg4[%c0_5, %c0_6] : memref<32x4xbf16, #tpu.memory_space<vmem>>, vector<32x4xbf16>
    %cst_7 = arith.constant dense<0.000000e+00> : vector<32x256xf32>
    %7 = tpu.matmul %6, %5, %cst_7 {dimension_numbers = #tpu.dot_dimension_numbers<[1], [1], [0], [0], [0, 0, 1, 0], [], []>} : vector<32x4xbf16>, vector<256x4xbf16>, vector<32x256xf32> -> vector<32x256xf32>
    %8 = arith.addf %3, %7 : vector<32x256xf32>
    %c0_8 = arith.constant 0 : index
    %c0_9 = arith.constant 0 : index
    %9 = vector.load %arg7[%c0_8, %c0_9] : memref<56x1xf32, #tpu.memory_space<vmem>>, vector<32x1xf32>
    %10 = vector.broadcast %9 : vector<32x1xf32> to vector<32x256xf32>
    %11 = arith.addf %8, %10 : vector<32x256xf32>
    %12 = math.tanh %11 : vector<32x256xf32>
    %c0_10 = arith.constant 0 : index
    %c0_11 = arith.constant 0 : index
    %13 = vector.load %arg5[%c0_10, %c0_11] : memref<16x32xbf16, #tpu.memory_space<vmem>>, vector<16x32xbf16>
    %14 = arith.truncf %12 : vector<32x256xf32> to vector<32x256xbf16>
    %cst_12 = arith.constant dense<0.000000e+00> : vector<16x256xf32>
    %15 = tpu.matmul %13, %14, %cst_12 {dimension_numbers = #tpu.dot_dimension_numbers<[1], [0], [0], [1], [0, 0, 1, 1], [], []>} : vector<16x32xbf16>, vector<32x256xbf16>, vector<16x256xf32> -> vector<16x256xf32>
    %c32 = arith.constant 32 : index
    %c0_13 = arith.constant 0 : index
    %16 = vector.load %arg7[%c32, %c0_13] : memref<56x1xf32, #tpu.memory_space<vmem>>, vector<16x1xf32>
    %17 = vector.broadcast %16 : vector<16x1xf32> to vector<16x256xf32>
    %18 = arith.addf %15, %17 : vector<16x256xf32>
    %19 = math.tanh %18 : vector<16x256xf32>
    %c0_14 = arith.constant 0 : index
    %c0_15 = arith.constant 0 : index
    %20 = vector.load %arg6[%c0_14, %c0_15] : memref<8x16xbf16, #tpu.memory_space<vmem>>, vector<8x16xbf16>
    %21 = arith.truncf %19 : vector<16x256xf32> to vector<16x256xbf16>
    %cst_16 = arith.constant dense<0.000000e+00> : vector<8x256xf32>
    %22 = tpu.matmul %20, %21, %cst_16 {dimension_numbers = #tpu.dot_dimension_numbers<[1], [0], [0], [1], [0, 0, 1, 1], [], []>} : vector<8x16xbf16>, vector<16x256xbf16>, vector<8x256xf32> -> vector<8x256xf32>
    %23 = vector.extract_strided_slice %22 {offsets = [0, 0], sizes = [1, 256], strides = [1, 1]} : vector<8x256xf32> to vector<1x256xf32>
    %c48 = arith.constant 48 : index
    %c0_17 = arith.constant 0 : index
    %24 = vector.load %arg7[%c48, %c0_17] : memref<56x1xf32, #tpu.memory_space<vmem>>, vector<1x1xf32>
    %25 = vector.broadcast %24 : vector<1x1xf32> to vector<1x256xf32>
    %26 = arith.addf %23, %25 : vector<1x256xf32>
    %c0_18 = arith.constant 0 : index
    %c0_19 = arith.constant 0 : index
    %27 = vector.load %arg8[%c0_18, %c0_19] : memref<1x256xf32, #tpu.memory_space<vmem>>, vector<1x256xf32>
    tpu.vector_store %arg8[%c0_18, %c0_19], %26 {strides = array<i32>} : memref<1x256xf32, #tpu.memory_space<vmem>>, vector<1x256xf32>,
    return
  }
  func.func @transform_0(%arg0: i32) -> (i32, i32) {
    %c0_i32 = arith.constant 0 : i32
    %c0_i32_0 = arith.constant 0 : i32
    return %arg0, %c0_i32 : i32, i32
  }
  func.func @transform_1(%arg0: i32) -> (i32, i32) {
    %c0_i32 = arith.constant 0 : i32
    %c0_i32_0 = arith.constant 0 : i32
    return %arg0, %c0_i32 : i32, i32
  }
  func.func @transform_2(%arg0: i32) -> (i32, i32) {
    %c0_i32 = arith.constant 0 : i32
    %c0_i32_0 = arith.constant 0 : i32
    %c0_i32_1 = arith.constant 0 : i32
    return %c0_i32, %c0_i32_0 : i32, i32
  }
  func.func @transform_3(%arg0: i32) -> (i32, i32) {
    %c0_i32 = arith.constant 0 : i32
    %c0_i32_0 = arith.constant 0 : i32
    %c0_i32_1 = arith.constant 0 : i32
    return %c0_i32, %c0_i32_0 : i32, i32
  }
  func.func @transform_4(%arg0: i32) -> (i32, i32) {
    %c0_i32 = arith.constant 0 : i32
    %c0_i32_0 = arith.constant 0 : i32
    %c0_i32_1 = arith.constant 0 : i32
    return %c0_i32, %c0_i32_0 : i32, i32
  }
  func.func @transform_5(%arg0: i32) -> (i32, i32) {
    %c0_i32 = arith.constant 0 : i32
    %c0_i32_0 = arith.constant 0 : i32
    %c0_i32_1 = arith.constant 0 : i32
    return %c0_i32, %c0_i32_0 : i32, i32
  }
  func.func @transform_6(%arg0: i32) -> (i32, i32) {
    %c0_i32 = arith.constant 0 : i32
    %c0_i32_0 = arith.constant 0 : i32
    %c0_i32_1 = arith.constant 0 : i32
    return %c0_i32, %c0_i32_0 : i32, i32
  }
  func.func @transform_7(%arg0: i32) -> (i32, i32) {
    %c0_i32 = arith.constant 0 : i32
    %c0_i32_0 = arith.constant 0 : i32
    return %c0_i32, %arg0 : i32, i32
  }
}

</mosaic_0001>

<bundles_post_ra>
// kernel: _forward_impl.1
= control target key start
LH: loop header
LB: loop body
LE: loop exit
PB: predicated region body
PF: predicated region fallthrough
CT: control target
= control target key end

     0   :  { %s1107_s24 = smov 0   ;;  %s1290_s0 = inlined_call_operand.vmem [shape: f32[300,4], index: 0, kind: input, shape index: {}]   ;;  %s1291_s1 = inlined_call_operand.vmem [shape: f32[300,4], index: 1, kind: input, shape index: {}]   ;;  %s1292_s2 = inlined_call_operand.vmem [shape: bf16[32,4], index: 2, kind: input, shape index: {}]   ;;  %s1293_s3 = inlined_call_operand.vmem [shape: bf16[32,4], index: 3, kind: input, shape index: {}]   ;;  %s1294_s4 = inlined_call_operand.vmem [shape: bf16[16,32], index: 4, kind: input, shape index: {}]   ;;  %s1295_s5 = inlined_call_operand.vmem [shape: bf16[8,16], index: 5, kind: input, shape index: {}]   ;;  %s1296_s6 = inlined_call_operand.vmem [shape: f32[56,1], index: 6, kind: input, shape index: {}]   ;;  %s1297_s7 = inlined_call_operand.vmem [shape: f32[1,512], index: 7, kind: output, shape index: {}]  }
   0x1 LB: > { %s937_s25 = sadd.s32 4294967295, %s1063_s24   ;;  %p941_p0 = scmp.ge.s32.totalorder %s1063_s24, 1  ;;  %s1063_s24 = sphi %s1107_s24, %s17_s24  }
   0x2   : > { %p265_p1 = scmp.lt.s32.totalorder %s1063_s24, 3 }
   0x4   : > { %p266_p2 = pnand %p941_p0, %p265_p1 }
   0x5   : > { %s942_s26 = sshll.u32 (!%p266_p2), %s937_s25, 5  ;;  %s946_s16 = sshll.u32 (!%p266_p2), %s937_s25, 1 }
   0x6   : > { %269 = sbr.rel (%p266_p2) target bundleno = 744 (0x2e8), region = 48  ;;  %p314_p3 = scmp.lt.s32.totalorder (!%p266_p2), %s942_s26, 37 }
   0x7   : > { %p338_p4 = scmp.lt.s32.totalorder (!%p266_p2), %s946_s16, 3 }
   0xb   : > { %vm457_vm0 = vcmask 31744   ;;  %v1120_v0 = vld [vmem:[%s1293_s3] sm:$0xff]   ;;  %s1299_s26 = smov (!%p314_p3, %s942_s26), 37  ;;  %v1065_v2 = vmov 0   ;;  %v684_v3 = vld [vmem:[%s1296_s6 + $0x10] sm:$0xff]  ;;  %v685_v5 = vld [vmem:[%s1296_s6 + $0x18] sm:$0xff] }
   0xc   : > { %v1125_v1 = vld [vmem:[%s1292_s2] sm:$0xff]   ;;  %976 = vmatprep.mubr.msk.bf16.mxu0 %vm457_vm0, %v1120_v0  ;;  %1026 = vset.pattern.permute.xlu0 %v1065_v2  ;;  %s943_s12 = sshll.u32 %s1299_s26, 3  ;;  %v683_v6 = vld [vmem:[%s1296_s6 + $0x8] sm:$0xff]  ;;  %v844_v39 = vld [vmem:[%s1296_s6 + $0x30] sm:$0x1]  ;;  %vm745_vm1 = vcmask 261120  }
   0xd   : > { %996 = vmatprep.mubr.msk.bf16.mxu1 %vm457_vm0, %v1125_v1  ;;  %1027 = vset.pattern.permute.xlu1 %v1065_v2  ;;  %v682_v4 = vld [vmem:[%s1296_s6] sm:$0xff]  ;;  %s1142_s15 = scalar_lea.vmem %s1291_s1, %s943_s12  ;;  %s1147_s18 = scalar_lea.vmem %s1290_s0, %s943_s12  ;;  %v729_v32 = vld [vmem:[%s1296_s6 + $0x28] sm:$0xff]  ;;  %vm799_vm2 = vcmask 130048  }
   0xe   : > { %698 = vperm.xlu0 %1026, %v684_v3   ;;  %688 = vperm.xlu1 %1027, %v682_v4   ;;  %v425_v7 = vld [vmem:[%s1142_s15 + $0xf0] sm:$0xff]  ;;  %v426_v8 = vld [vmem:[%s1142_s15 + $0xf8] sm:$0xff]  ;;  %v423_v18 = vld [vmem:[%s1142_s15 + $0xe0] sm:$0xff]  ;;  %s1301_s16 = smov (!%p338_p4, %s946_s16), 3 }
   0xf   : > { %v373_v9 = vld [vmem:[%s1147_s18 + $0xf0] sm:$0xff]  ;;  %v442_v10 = vpack.c.bf16 %v426_v8, %v425_v7  ;;  %v374_v11 = vld [vmem:[%s1147_s18 + $0xf8] sm:$0xff]  ;;  %v728_v19 = vld [vmem:[%s1296_s6 + $0x20] sm:$0xff]  ;;  %s340_s19 = scalar_lea.vmem %s1297_s7, %s1301_s16 }
  0x10   : > { %v409_v12 = vld [vmem:[%s1142_s15 + $0x70] sm:$0xff]  ;;  %v410_v13 = vld [vmem:[%s1142_s15 + $0x78] sm:$0xff]  ;;  %v390_v14 = vpack.c.bf16 %v374_v11, %v373_v9  ;;  %v424_v21 = vld [vmem:[%s1142_s15 + $0xe8] sm:$0xff] }
  0x11   : > { %v434_v15 = vpack.c.bf16 %v410_v13, %v409_v12  ;;  %v357_v16 = vld [vmem:[%s1147_s18 + $0x70] sm:$0xff]  ;;  %v358_v17 = vld [vmem:[%s1147_s18 + $0x78] sm:$0xff]  ;;  %1000 = vmatprep.subr.msk.bf16.mxu0 %vm457_vm0, %v442_v10  ;;  %v371_v22 = vld [vmem:[%s1147_s18 + $0xe0] sm:$0xff]  ;;  %v441_v25 = vpack.c.bf16 %v424_v21, %v423_v18 }
  0x12   : > { %703 = vperm.xlu0 %1026, %v685_v5   ;;  %693 = vperm.xlu1 %1027, %v683_v6   ;;  %v382_v20 = vpack.c.bf16 %v358_v17, %v357_v16  ;;  %v372_v23 = vld [vmem:[%s1147_s18 + $0xe8] sm:$0xff]  ;;  %v407_v27 = vld [vmem:[%s1142_s15 + $0x60] sm:$0xff]  ;;  %v421_v35 = vld [vmem:[%s1142_s15 + $0xd0] sm:$0xff] }
  0x13   : > { %1008 = vmatprep.subr.msk.bf16.mxu1 %vm457_vm0, %v390_v14  ;;  %v486_v24 = vsel %vm457_vm0, %v434_v15, 0  ;;  %v389_v26 = vpack.c.bf16 %v372_v23, %v371_v22  ;;  %v408_v28 = vld [vmem:[%s1142_s15 + $0x68] sm:$0xff]  ;;  %v355_v29 = vld [vmem:[%s1147_s18 + $0x60] sm:$0xff]  ;;  %v422_v36 = vld [vmem:[%s1142_s15 + $0xd8] sm:$0xff] }
  0x14   : > { %961 = vmatpush3.bf16.xpose.msra.mxu0 %v486_v24  ;;  %v603_v30 = vsel %vm457_vm0, %v382_v20, 0  ;;  %v356_v31 = vld [vmem:[%s1147_s18 + $0x68] sm:$0xff]  ;;  %v433_v33 = vpack.c.bf16 %v408_v28, %v407_v27  ;;  %v369_v37 = vld [vmem:[%s1147_s18 + $0xd0] sm:$0xff]  ;;  %v370_v38 = vld [vmem:[%s1147_s18 + $0xd8] sm:$0xff]  ;;  %v440_v41 = vpack.c.bf16 %v422_v36, %v421_v35 }
  0x15   : > { %981 = vmatpush3.bf16.xpose.msra.mxu1 %v603_v30  ;;  %1001 = vmatprep.subr.msk.bf16.mxu0 %vm457_vm0, %v441_v25  ;;  %v381_v34 = vpack.c.bf16 %v356_v31, %v355_v29  ;;  %v388_v43 = vpack.c.bf16 %v370_v38, %v369_v37  ;;  %v405_v44 = vld [vmem:[%s1142_s15 + $0x50] sm:$0xff]  ;;  %v406_v45 = vld [vmem:[%s1142_s15 + $0x58] sm:$0xff]  ;;  %v419_v50 = vld [vmem:[%s1142_s15 + $0xc0] sm:$0xff] }
  0x16   : > { %1009 = vmatprep.subr.msk.bf16.mxu1 %vm457_vm0, %v389_v26  ;;  %732 = vperm.xlu0 %1026, %v728_v19   ;;  %v483_v40 = vsel %vm457_vm0, %v433_v33, 0  ;;  %v353_v46 = vld [vmem:[%s1147_s18 + $0x50] sm:$0xff]  ;;  %v354_v47 = vld [vmem:[%s1147_s18 + $0x58] sm:$0xff]  ;;  %v432_v48 = vpack.c.bf16 %v406_v45, %v405_v44  ;;  %v420_v51 = vld [vmem:[%s1142_s15 + $0xc8] sm:$0xff] }
  0x17   : > { %737 = vperm.xlu1 %1027, %v729_v32   ;;  %v600_v42 = vsel %vm457_vm0, %v381_v34, 0  ;;  %v380_v49 = vpack.c.bf16 %v354_v47, %v353_v46  ;;  %v367_v52 = vld [vmem:[%s1147_s18 + $0xc0] sm:$0xff]  ;;  %v368_v53 = vld [vmem:[%s1147_s18 + $0xc8] sm:$0xff]  ;;  %v439_v55 = vpack.c.bf16 %v420_v51, %v419_v50  ;;  %v417_v3 = vld [vmem:[%s1142_s15 + $0xb0] sm:$0xff] }
  0x18   : > { %v480_v54 = vsel %vm457_vm0, %v432_v48, 0  ;;  %v387_v57 = vpack.c.bf16 %v368_v53, %v367_v52  ;;  %v403_v58 = vld [vmem:[%s1142_s15 + $0x40] sm:$0xff]  ;;  %v404_v59 = vld [vmem:[%s1142_s15 + $0x48] sm:$0xff]  ;;  %v418_v4 = vld [vmem:[%s1142_s15 + $0xb8] sm:$0xff] }
  0x19   : > { %v597_v56 = vsel %vm457_vm0, %v380_v49, 0  ;;  %v351_v60 = vld [vmem:[%s1147_s18 + $0x40] sm:$0xff]  ;;  %v352_v61 = vld [vmem:[%s1147_s18 + $0x48] sm:$0xff]  ;;  %v431_v62 = vpack.c.bf16 %v404_v59, %v403_v58  ;;  %v365_v5 = vld [vmem:[%s1147_s18 + $0xb0] sm:$0xff]  ;;  %v438_v8 = vpack.c.bf16 %v418_v4, %v417_v3 }
  0x1a   : > { %847 = vperm.xlu0 %1026, %v844_v39   ;;  %v379_v63 = vpack.c.bf16 %v352_v61, %v351_v60  ;;  %v366_v6 = vld [vmem:[%s1147_s18 + $0xb8] sm:$0xff]  ;;  %v401_v11 = vld [vmem:[%s1142_s15 + $0x30] sm:$0xff]  ;;  %v415_v17 = vld [vmem:[%s1142_s15 + $0xa0] sm:$0xff] }
  0x1b   : > { %v477_v7 = vsel %vm457_vm0, %v431_v62, 0  ;;  %v386_v10 = vpack.c.bf16 %v366_v6, %v365_v5  ;;  %v402_v12 = vld [vmem:[%s1142_s15 + $0x38] sm:$0xff]  ;;  %v349_v13 = vld [vmem:[%s1147_s18 + $0x30] sm:$0xff]  ;;  %v416_v18 = vld [vmem:[%s1142_s15 + $0xa8] sm:$0xff] }
  0x1c   : > { %963 = vmatpush3.bf16.xpose.msra.mxu0 %v483_v40  ;;  %v594_v9 = vsel %vm457_vm0, %v379_v63, 0  ;;  %v350_v14 = vld [vmem:[%s1147_s18 + $0x38] sm:$0xff]  ;;  %v430_v15 = vpack.c.bf16 %v402_v12, %v401_v11  ;;  %v363_v19 = vld [vmem:[%s1147_s18 + $0xa0] sm:$0xff]  ;;  %v364_v20 = vld [vmem:[%s1147_s18 + $0xa8] sm:$0xff]  ;;  %v437_v22 = vpack.c.bf16 %v416_v18, %v415_v17 }
  0x1d   : > { %983 = vmatpush3.bf16.xpose.msra.mxu1 %v600_v42  ;;  %1002 = vmatprep.subr.msk.bf16.mxu0 %vm457_vm0, %v440_v41  ;;  %v378_v16 = vpack.c.bf16 %v350_v14, %v349_v13  ;;  %v385_v24 = vpack.c.bf16 %v364_v20, %v363_v19  ;;  %v399_v25 = vld [vmem:[%s1142_s15 + $0x20] sm:$0xff]  ;;  %v400_v26 = vld [vmem:[%s1142_s15 + $0x28] sm:$0xff]  ;;  %v413_v31 = vld [vmem:[%s1142_s15 + $0x90] sm:$0xff] }
  0x1e   : > { %1010 = vmatprep.subr.msk.bf16.mxu1 %vm457_vm0, %v388_v43  ;;  %v474_v21 = vsel %vm457_vm0, %v430_v15, 0  ;;  %v347_v27 = vld [vmem:[%s1147_s18 + $0x20] sm:$0xff]  ;;  %v348_v28 = vld [vmem:[%s1147_s18 + $0x28] sm:$0xff]  ;;  %v429_v29 = vpack.c.bf16 %v400_v26, %v399_v25  ;;  %v414_v32 = vld [vmem:[%s1142_s15 + $0x98] sm:$0xff] }
  0x1f   : > { %v591_v23 = vsel %vm457_vm0, %v378_v16, 0  ;;  %v377_v30 = vpack.c.bf16 %v348_v28, %v347_v27  ;;  %v361_v33 = vld [vmem:[%s1147_s18 + $0x90] sm:$0xff]  ;;  %v362_v34 = vld [vmem:[%s1147_s18 + $0x98] sm:$0xff]  ;;  %v436_v36 = vpack.c.bf16 %v414_v32, %v413_v31  ;;  %v411_v45 = vld [vmem:[%s1142_s15 + $0x80] sm:$0xff] }
  0x20   : > { %v471_v35 = vsel %vm457_vm0, %v429_v29, 0  ;;  %v384_v38 = vpack.c.bf16 %v362_v34, %v361_v33  ;;  %v397_v39 = vld [vmem:[%s1142_s15 + $0x10] sm:$0xff]  ;;  %v398_v40 = vld [vmem:[%s1142_s15 + $0x18] sm:$0xff]  ;;  %v412_v46 = vld [vmem:[%s1142_s15 + $0x88] sm:$0xff] }
  0x21   : > { %v588_v37 = vsel %vm457_vm0, %v377_v30, 0  ;;  %v345_v41 = vld [vmem:[%s1147_s18 + $0x10] sm:$0xff]  ;;  %v346_v42 = vld [vmem:[%s1147_s18 + $0x18] sm:$0xff]  ;;  %v428_v43 = vpack.c.bf16 %v398_v40, %v397_v39  ;;  %v359_v47 = vld [vmem:[%s1147_s18 + $0x80] sm:$0xff]  ;;  %v435_v50 = vpack.c.bf16 %v412_v46, %v411_v45 }
  0x22   : > { %v376_v44 = vpack.c.bf16 %v346_v42, %v345_v41  ;;  %v360_v48 = vld [vmem:[%s1147_s18 + $0x88] sm:$0xff]  ;;  %v395_v53 = vld [vmem:[%s1142_s15] sm:$0xff] }
  0x23   : > { %v468_v49 = vsel %vm457_vm0, %v428_v43, 0  ;;  %v383_v52 = vpack.c.bf16 %v360_v48, %v359_v47  ;;  %v1030_v61 = vld [vmem:[%s1293_s3 + $0x8] sm:$0xff]   ;;  %v1032_v47 = vld [vmem:[%s1294_s4] sm:$0xff]  }
  0x24   : > { %965 = vmatpush3.bf16.xpose.msra.mxu0 %v480_v54  ;;  %v585_v51 = vsel %vm457_vm0, %v376_v44, 0  ;;  %v396_v54 = vld [vmem:[%s1142_s15 + $0x8] sm:$0xff] }
  0x25   : > { %985 = vmatpush3.bf16.xpose.msra.mxu1 %v597_v56  ;;  %1003 = vmatprep.subr.msk.bf16.mxu0 %vm457_vm0, %v439_v55  ;;  %v343_v55 = vld [vmem:[%s1147_s18] sm:$0xff]  ;;  %v344_v56 = vld [vmem:[%s1147_s18 + $0x8] sm:$0xff] }
  0x26   : > { %1011 = vmatprep.subr.msk.bf16.mxu1 %vm457_vm0, %v387_v57  ;;  %v427_v57 = vpack.c.bf16 %v396_v54, %v395_v53  ;;  %v375_v58 = vpack.c.bf16 %v344_v56, %v343_v55  ;;  %v1031_v62 = vld [vmem:[%s1292_s2 + $0x8] sm:$0xff]  }
  0x28   : > { %v465_v59 = vsel %vm457_vm0, %v427_v57, 0  ;;  %v582_v60 = vsel %vm457_vm0, %v375_v58, 0 }
  0x2c   : > { %967 = vmatpush3.bf16.xpose.msra.mxu0 %v477_v7 }
  0x2d   : > { %987 = vmatpush3.bf16.xpose.msra.mxu1 %v594_v9  ;;  %1004 = vmatprep.subr.msk.bf16.mxu0 %vm457_vm0, %v438_v8 }
  0x2e   : > { %1012 = vmatprep.subr.msk.bf16.mxu1 %vm457_vm0, %v386_v10 }
  0x34   : > { %969 = vmatpush3.bf16.xpose.msra.mxu0 %v474_v21 }
  0x35   : > { %989 = vmatpush3.bf16.xpose.msra.mxu1 %v591_v23  ;;  %1005 = vmatprep.subr.msk.bf16.mxu0 %vm457_vm0, %v437_v22 }
  0x36   : > { %1013 = vmatprep.subr.msk.bf16.mxu1 %vm457_vm0, %v385_v24 }
  0x3c   : > { %971 = vmatpush3.bf16.xpose.msra.mxu0 %v471_v35 }
  0x3d   : > { %991 = vmatpush3.bf16.xpose.msra.mxu1 %v588_v37  ;;  %1006 = vmatprep.subr.msk.bf16.mxu0 %vm457_vm0, %v436_v36 }
  0x3e   : > { %1014 = vmatprep.subr.msk.bf16.mxu1 %vm457_vm0, %v384_v38 }
  0x44   : > { %973 = vmatpush3.bf16.xpose.msra.mxu0 %v468_v49 }
  0x45   : > { %993 = vmatpush3.bf16.xpose.msra.mxu1 %v585_v51  ;;  %1007 = vmatprep.subr.msk.bf16.mxu0 %vm457_vm0, %v435_v50 }
  0x46   : > { %1015 = vmatprep.subr.msk.bf16.mxu1 %vm457_vm0, %v383_v52 }
  0x4c   : > { %975 = vmatpush3.bf16.xpose.msra.mxu0 %v465_v59 }
  0x4d   : > { %995 = vmatpush3.bf16.xpose.msra.mxu1 %v582_v60 }
  0x53   : > { %977 = vmatmul.mubr.msk.bf16.vlgmr.msra.gmra.mxu0 %vm457_vm0, %v1120_v0 }
  0x54   : > { %997 = vmatmul.mubr.msk.bf16.vlgmr.msra.gmra.mxu1 %vm457_vm0, %v1125_v1  ;;  %978 = vmatprep.mubr.msk.bf16.mxu0 %vm457_vm0, %v1030_v61 }
  0x55   : > { %998 = vmatprep.mubr.msk.bf16.mxu1 %vm457_vm0, %v1031_v62 }
  0x5b   : > { %979 = vmatmul.mubr.msk.bf16.gmra.mxu0 %vm457_vm0, %v1030_v61 }
  0x5c   : > { %999 = vmatmul.mubr.msk.bf16.gmra.mxu1 %vm457_vm0, %v1031_v62  ;;  %781 = vmatprep.mubr.bf16.mxu0 %v1065_v2 }
  0x5d   : > { %835 = vmatprep.mubr.bf16.mxu1 %v1065_v2 }
  0x89   : > { %v689_v7 = vpop.permute.xlu1 %688  ;;  %v699_v10 = vpop.permute.xlu0 %698 }
  0x8d   : > { %v694_v15 = vpop.permute.xlu1 %693  ;;  %v704_v24 = vpop.permute.xlu0 %703 }
  0x91   : > { %v733_v49 = vpop.permute.xlu0 %732 }
  0x92   : > { %v738_v52 = vpop.permute.xlu1 %737 }
 0x113   : > { %v546_v63 = vpop.f32.mrf.mxu0 }
 0x114   : > { %v663_v3 = vpop.f32.mrf.mxu1 }
 0x115   : > { %v548_v4 = vpop.f32.mrf.mxu0  ;;  %v664_v29 = vadd.f32 %v663_v3, %v546_v63  ;;  %v796_v3 = vld [vmem:[%s1295_s5] sm:$0xf] }
 0x116   : > { %v665_v5 = vpop.f32.mrf.mxu1 }
 0x117   : > { %v550_v0 = vpop.f32.mrf.mxu0  ;;  %v666_v20 = vadd.f32 %v665_v5, %v548_v4  ;;  %v706_v34 = vadd.f32 %v689_v7, %v664_v29  ;;  %v1066_v4 = vmov 1966171168  }
 0x118   : > { %v667_v6 = vpop.f32.mrf.mxu1  ;;  %v856_v5 = vunpack.c.l.s4 %v1066_v4 }
 0x119   : > { %v552_v1 = vpop.f32.mrf.mxu0  ;;  %v668_v25 = vadd.f32 %v667_v6, %v550_v0  ;;  %v707_v31 = vadd.f32 %v689_v7, %v666_v20  ;;  %v858_v0 = vlaneseq }
 0x11a   : > { %v669_v8 = vpop.f32.mrf.mxu1  ;;  %v857_v6 = vunpack.c.0.s8 %v856_v5 }
 0x11b   : > { %v556_v9 = vpop.f32.mrf.mxu0  ;;  %v670_v11 = vadd.f32 %v669_v8, %v552_v1  ;;  %v708_v33 = vadd.f32 %v694_v15, %v668_v25  ;;  %v859_v7 = vshrl.u32 %v858_v0, 7  ;;  %v848_v8 = vpop.permute.xlu0 %847  ;;  %vm872_vm3 = vcmp.lt.s32.totalorder %v858_v0, 256 }
 0x11c   : > { %v673_v12 = vpop.f32.mrf.mxu1 }
 0x11d   : > { %v558_v13 = vpop.f32.mrf.mxu0  ;;  %v709_v18 = vadd.f32 %v694_v15, %v670_v11  ;;  %v674_v2 = vadd.f32 %v673_v12, %v556_v9  ;;  %v860_v12 = vsub.s32 %v857_v6, %v859_v7 }
 0x11e   : > { %v675_v14 = vpop.f32.mrf.mxu1 }
 0x11f   : > { %v676_v16 = vadd.f32 %v675_v14, %v558_v13  ;;  %v560_v17 = vpop.f32.mrf.mxu0  ;;  %1033 = vtanh.f32 %v709_v18  ;;  %v710_v30 = vadd.f32 %v699_v10, %v674_v2 }
 0x120   : > { %v677_v19 = vpop.f32.mrf.mxu1 }
 0x121   : > { %v711_v21 = vadd.f32 %v699_v10, %v676_v16  ;;  %v678_v22 = vadd.f32 %v677_v19, %v560_v17  ;;  %v562_v23 = vpop.f32.mrf.mxu0 }
 0x122   : > { %v679_v26 = vpop.f32.mrf.mxu1 }
 0x123   : > { %v712_v27 = vadd.f32 %v704_v24, %v678_v22  ;;  %v680_v28 = vadd.f32 %v679_v26, %v562_v23  ;;  %1035 = vtanh.f32 %v711_v21 }
 0x125   : > { %v713_v32 = vadd.f32 %v704_v24, %v680_v28  ;;  %1037 = vtanh.f32 %v712_v27 }
 0x127   : > { %1039 = vtanh.f32 %v713_v32 }
 0x128   : > { %1041 = vtanh.f32 %v710_v30 }
 0x129   : > { %1043 = vtanh.f32 %v707_v31 }
 0x12a   : > { %1045 = vtanh.f32 %v708_v33 }
 0x12b   : > { %1047 = vtanh.f32 %v706_v34 }
 0x12c   : > { %v1034_v35 = vpop.eup %1033 }
 0x130   : > { %v1036_v36 = vpop.eup %1035 }
 0x132   : > { %v1038_v37 = vpop.eup %1037 }
 0x134   : > { %v1040_v38 = vpop.eup %1039 }
 0x135   : > { %v1042_v39 = vpop.eup %1041  ;;  %v727_v40 = vpack.c.bf16 %v1040_v38, %v1036_v36 }
 0x136   : > { %v1044_v41 = vpop.eup %1043  ;;  %v726_v42 = vpack.c.bf16 %v1038_v37, %v1042_v39 }
 0x137   : > { %v1046_v43 = vpop.eup %1045  ;;  %761 = vmatprep.subr.bf16.mxu0 %v727_v40  ;;  %v725_v44 = vpack.c.bf16 %v1034_v35, %v1044_v41 }
 0x138   : > { %762 = vmatpush1.bf16.msra.mxu0 %v726_v42  ;;  %v1048_v45 = vpop.eup %1047 }
 0x139   : > { %763 = vmatprep.subr.bf16.mxu0 %v725_v44  ;;  %v724_v46 = vpack.c.bf16 %v1046_v43, %v1048_v45 }
 0x13c   : > { %764 = vmatpush1.bf16.msra.mxu0 %v724_v46 }
 0x13f   : > { %956 = vmatmul.mubr.msk.bf16.vlgmr.msra.gmra.mxu0 %vm745_vm1, %v1032_v47 }
 0x1ff   : > { %v783_v48 = vpop.f32.mrf.mxu0 }
 0x200   : > { %v784_v55 = vadd.f32 %v783_v48, %v733_v49 }
 0x201   : > { %v785_v50 = vpop.f32.mrf.mxu0 }
 0x202   : > { %v786_v51 = vadd.f32 %v785_v50, %v733_v49 }
 0x203   : > { %v787_v53 = vpop.f32.mrf.mxu0 }
 0x204   : > { %v788_v54 = vadd.f32 %v787_v53, %v738_v52  ;;  %1049 = vtanh.f32 %v786_v51 }
 0x205   : > { %v789_v56 = vpop.f32.mrf.mxu0 }
 0x206   : > { %v790_v57 = vadd.f32 %v789_v56, %v738_v52  ;;  %1051 = vtanh.f32 %v788_v54 }
 0x208   : > { %1053 = vtanh.f32 %v790_v57 }
 0x209   : > { %1055 = vtanh.f32 %v784_v55 }
 0x211   : > { %v1050_v58 = vpop.eup %1049 }
 0x213   : > { %v1052_v59 = vpop.eup %1051 }
 0x215   : > { %v1054_v60 = vpop.eup %1053 }
 0x216   : > { %v1056_v61 = vpop.eup %1055  ;;  %v798_v62 = vpack.c.bf16 %v1054_v60, %v1050_v58 }
 0x217   : > { %v797_v63 = vpack.c.bf16 %v1052_v59, %v1056_v61 }
 0x218   : > { %817 = vmatprep.subr.bf16.mxu1 %v798_v62 }
 0x219   : > { %818 = vmatpush1.bf16.msra.mxu1 %v797_v63 }
 0x21c   : > { %957 = vmatmul.mubr.msk.bf16.vlgmr.msra.gmra.mxu1 %vm799_vm2, %v796_v3 }
 0x2dc   : > { %v837_v1 = vpop.f32.mrf.mxu1 }
 0x2dd   : > { %v850_v10 = vadd.f32 %v848_v8, %v837_v1 }
 0x2de   : > { %v839_v9 = vpop.f32.mrf.mxu1 }
 0x2df   : > { %v851_v11 = vadd.f32 %v848_v8, %v839_v9 }
 0x2e0   : > { %v841_v13 = vpop.f32.mrf.mxu1 }
 0x2e1   : > { %v854_v14 = vcombine.low %v850_v10, %v851_v11 }
 0x2e2   : > { %v842_v15 = vpop.f32.mrf.mxu1 }
 0x2e3   : > { %v861_v16 = vrot.slane %v854_v14, %v860_v12 }
 0x2e5   : > { %v868_v17 = vrot.slane %v861_v16, %v860_v12 }
 0x2e7   : > { %874 = vst.msk [vmem:[%s340_s19] sm:$0x3] %vm872_vm3, %v868_v17 }
 0x2e8 PF: > { %s17_s24 = sadd.s32 1, %s1063_s24  }
 0x2e9   : > { %p14_p5 = scmp.ge.s32.totalorder %s17_s24, 4  }
 0x2eb   :  { %16 = sbr.rel (!%p14_p5) target bundleno = 1 (0x1), region = 81 }

</bundles_post_ra>
